<compile_context>
chip_gen: v7x
topology: tpu7x:2x2x1
jax: 0.10.0
libtpu: 0.0.40
codegen_flags: <defaults>
</compile_context>

<pallas_src>
import functools

import numpy as np

import jax
import jax.numpy as jnp
from jax import lax
from jax.experimental import pallas as pl
from jax.experimental.pallas import tpu as pltpu


def _wgan_gp_kernel(pred_real_ref, pred_fake_ref, alpha_ref, real_ref, fake_ref,
                    w1_ref, b1_ref, w2t_ref, out_ref,
                    acc_real_ref, acc_fake_ref, acc_gp_ref,
                    *, lambda_gp, batch_size):
    i = pl.program_id(0)

    # ---- init accumulators on the first batch tile -------------------------
    @pl.when(i == 0)
    def _init():
        acc_real_ref[...] = jnp.zeros_like(acc_real_ref)
        acc_fake_ref[...] = jnp.zeros_like(acc_fake_ref)
        acc_gp_ref[...] = jnp.zeros_like(acc_gp_ref)

    # ---- Wasserstein partial sums for this tile ----------------------------
    acc_real_ref[...] += jnp.sum(pred_real_ref[...])
    acc_fake_ref[...] += jnp.sum(pred_fake_ref[...])

    # ---- interpolation (samples streamed as bf16, math in f32) -------------
    alpha = alpha_ref[...]                                      # (tB, 1) f32
    real = real_ref[...].astype(jnp.float32)                    # (tB, F)
    fake = fake_ref[...].astype(jnp.float32)                    # (tB, F)
    x = alpha * real + (1.0 - alpha) * fake                     # (tB, F)

    # ---- analytic gradient of D(x) = relu(x W1 + b1) W2 + b2 wrt x ---------
    h = jnp.dot(x, w1_ref[...],
                preferred_element_type=jnp.float32) + b1_ref[...]   # (tB, Hd)
    u = (h > 0.0).astype(jnp.float32) * w2t_ref[...]                # (tB, Hd)
    # grads = u @ W1^T, expressed with transposed contraction dims so W1^T is
    # never materialized in HBM (single resident copy of W1).
    grads = lax.dot_general(u, w1_ref[...],
                            dimension_numbers=(((1,), (1,)), ((), ())),
                            preferred_element_type=jnp.float32)     # (tB, F)

    # ---- gradient-penalty partial sum ---------------------------------------
    sumsq = jnp.sum(grads * grads, axis=1, keepdims=True)           # (tB, 1)
    gnorm = jnp.sqrt(sumsq)                                         # (tB, 1)
    acc_gp_ref[...] += jnp.sum((gnorm - 1.0) ** 2)

    # ---- finalize on the last tile ------------------------------------------
    @pl.when(i == pl.num_programs(0) - 1)
    def _finalize():
        inv_b = 1.0 / batch_size
        wasserstein = (acc_fake_ref[...] - acc_real_ref[...]) * inv_b
        gp = acc_gp_ref[...] * (lambda_gp * inv_b)
        out_ref[...] = wasserstein + gp


def _auto_tile_b(B, F, itemsize):
    """Largest power-of-two-ish multiple of 8 dividing B that keeps the two
    double-buffered sample streams within a modest per-stream VMEM budget."""
    if B % 8 != 0:
        return B  # single full-batch tile (block == full dim satisfies tiling rules)
    budget = 8 * 1024 * 1024
    best, t = 8, 8
    while t <= B:
        if B % t == 0 and 4 * t * F * itemsize <= budget:
            best = t
        t *= 2
    return best


def wgan_gp_discriminator_loss(pred_real, pred_fake, real_samples, fake_samples,
                               alpha, w1, b1, w2, lambda_gp=10.0, tile_b=None,
                               sample_dtype=jnp.bfloat16):
    """pred_real/pred_fake: (B, 1).  real/fake_samples: (B, C, H, W) NCHW.
    alpha: (B, 1) (or (B,1,1,1)) uniform randoms (mirrors torch.rand(B,1,1,1)).
    w1: (F, Hd), b1: (Hd,), w2: (Hd, 1).  Samples are streamed as `sample_dtype`
    (bf16 by default) and upcast to f32 inside the kernel."""
    B = real_samples.shape[0]
    F = int(np.prod(real_samples.shape[1:]))
    Hd = w1.shape[1]

    itemsize = np.dtype(sample_dtype).itemsize
    if tile_b is None:
        tile_b = _auto_tile_b(B, F, itemsize)
    if B % tile_b != 0:
        raise ValueError(f"batch {B} must be divisible by tile_b {tile_b}")
    if tile_b != B and tile_b % 8 != 0:
        raise ValueError("tile_b must be a multiple of 8 (or equal to the batch)")

    real_flat = real_samples.reshape(B, F).astype(sample_dtype)
    fake_flat = fake_samples.reshape(B, F).astype(sample_dtype)
    alpha_f = alpha.reshape(B, 1).astype(jnp.float32)
    pred_real_f = pred_real.reshape(B, 1).astype(jnp.float32)
    pred_fake_f = pred_fake.reshape(B, 1).astype(jnp.float32)
    w1_f = w1.astype(jnp.float32)                 # (F, Hd), single resident copy
    b1_row = b1.reshape(1, Hd).astype(jnp.float32)
    w2_row = w2.reshape(1, Hd).astype(jnp.float32)

    # VMEM budget: double-buffered sample tiles + resident weights + f32
    # intermediates; capped for v7x's 64 MiB physical VMEM.
    vmem_est = (2 * 2 * tile_b * F * itemsize      # real + fake tiles, 2-deep
                + 2 * F * Hd * 4                   # resident W1 (allow 2 bufs)
                + 4 * tile_b * F * 4               # x, grads, temps (f32)
                + (2 << 20))                       # misc headroom
    vmem_limit = int(min(max(vmem_est, 16 * 1024 * 1024), 48 * 1024 * 1024))

    kernel = functools.partial(_wgan_gp_kernel,
                               lambda_gp=float(lambda_gp),
                               batch_size=float(B))
    grid = (B // tile_b,)

    out = pl.pallas_call(
        kernel,
        out_shape=jax.ShapeDtypeStruct((1, 1), jnp.float32),
        grid_spec=pltpu.PrefetchScalarGridSpec(
            num_scalar_prefetch=0,
            grid=grid,
            in_specs=[
                pl.BlockSpec((tile_b, 1), lambda i: (i, 0)),   # pred_real
                pl.BlockSpec((tile_b, 1), lambda i: (i, 0)),   # pred_fake
                pl.BlockSpec((tile_b, 1), lambda i: (i, 0)),   # alpha
                pl.BlockSpec((tile_b, F), lambda i: (i, 0)),   # real (bf16 stream)
                pl.BlockSpec((tile_b, F), lambda i: (i, 0)),   # fake (bf16 stream)
                pl.BlockSpec((F, Hd), lambda i: (0, 0)),       # W1 (resident)
                pl.BlockSpec((1, Hd), lambda i: (0, 0)),       # b1 (resident)
                pl.BlockSpec((1, Hd), lambda i: (0, 0)),       # W2^T (resident)
            ],
            out_specs=pl.BlockSpec((1, 1), lambda i: (0, 0)),
            scratch_shapes=[
                pltpu.VMEM((1, 1), jnp.float32),   # sum(pred_real)
                pltpu.VMEM((1, 1), jnp.float32),   # sum(pred_fake)
                pltpu.VMEM((1, 1), jnp.float32),   # sum((||g||-1)^2)
            ],
        ),
        compiler_params=pltpu.CompilerParams(
            # batch axis carries the accumulators -> must stay "arbitrary";
            # a per-core partial-sum variant could mark it parallel on v7x.
            dimension_semantics=("arbitrary",),
            vmem_limit_bytes=vmem_limit,
        ),
    )(pred_real_f, pred_fake_f, alpha_f, real_flat, fake_flat,
      w1_f, b1_row, w2_row)
    return out[0, 0]


# ---------------------- pure-JAX reference (for checking) ----------------------
def _disc(x_flat, w1, b1, w2, b2):
    h = jnp.maximum(x_flat @ w1 + b1, 0.0)
    return h @ w2 + b2


def _ref_loss(pred_real, pred_fake, real, fake, alpha, w1, b1, w2, b2,
              lambda_gp=10.0):
    B = real.shape[0]
    real_f = real.reshape(B, -1)
    fake_f = fake.reshape(B, -1)
    w_loss = -jnp.mean(pred_real) + jnp.mean(pred_fake)
    x = alpha.reshape(B, 1) * real_f + (1.0 - alpha.reshape(B, 1)) * fake_f

    def d_scalar(xi):
        return _disc(xi[None, :], w1, b1, w2, b2)[0, 0]

    grads = jax.vmap(jax.grad(d_scalar))(x)
    gnorm = jnp.sqrt(jnp.sum(grads ** 2, axis=1))
    gp = jnp.mean((gnorm - 1.0) ** 2) * lambda_gp
    return w_loss + gp


if __name__ == "__main__":
    B, C, H, W = 16, 4, 16, 16
    F = C * H * W            # 1024
    HIDDEN = 32
    LAMBDA_GP = 10.0

    key = jax.random.PRNGKey(0)
    k_real, k_fake, k_alpha, k_w1, k_b1, k_w2 = jax.random.split(key, 6)

    real = jax.random.normal(k_real, (B, C, H, W), jnp.float32)
    fake = jax.random.normal(k_fake, (B, C, H, W), jnp.float32)
    alpha = jax.random.uniform(k_alpha, (B, 1), jnp.float32)  # torch.rand(B,1,1,1)

    # deterministic discriminator parameters (synthetic 2-layer MLP)
    w1 = jax.random.normal(k_w1, (F, HIDDEN), jnp.float32) * 0.05
    b1 = jax.random.normal(k_b1, (HIDDEN,), jnp.float32) * 0.05
    w2 = jax.random.normal(k_w2, (HIDDEN, 1), jnp.float32) * 0.05
    b2 = jnp.float32(0.1)

    # The kernel streams the samples as bf16 (HBM-traffic optimization), so the
    # reference is evaluated on the identically bf16-rounded samples to compare
    # the exact same discriminator math.
    real_rt = real.astype(jnp.bfloat16).astype(jnp.float32)
    fake_rt = fake.astype(jnp.bfloat16).astype(jnp.float32)

    # pred_real / pred_fake as the discriminator would produce them
    pred_real = _disc(real_rt.reshape(B, F), w1, b1, w2, b2)   # (B, 1)
    pred_fake = _disc(fake_rt.reshape(B, F), w1, b1, w2, b2)   # (B, 1)

    loss = wgan_gp_discriminator_loss(pred_real, pred_fake, real, fake,
                                      alpha, w1, b1, w2, lambda_gp=LAMBDA_GP,
                                      tile_b=8)   # grid of 2 to exercise accumulation
    loss = jax.block_until_ready(loss)

    ref = _ref_loss(pred_real, pred_fake, real_rt, fake_rt, alpha,
                    w1, b1, w2, b2, lambda_gp=LAMBDA_GP)
    assert jnp.allclose(loss, ref, rtol=1e-4, atol=1e-4), (loss, ref)

    print("KERNEL_OK")
</pallas_src>

<mosaic_0001>
module attributes {stable_mosaic.version = 11 : i64} {
  func.func @_wgan_gp_kernel(%arg0: i32, %arg1: memref<8x1xf32, #tpu.memory_space<vmem>>, %arg2: memref<8x1xf32, #tpu.memory_space<vmem>>, %arg3: memref<8x1xf32, #tpu.memory_space<vmem>>, %arg4: memref<8x1024xbf16, #tpu.memory_space<vmem>>, %arg5: memref<8x1024xbf16, #tpu.memory_space<vmem>>, %arg6: memref<1024x32xf32, #tpu.memory_space<vmem>>, %arg7: memref<1x32xf32, #tpu.memory_space<vmem>>, %arg8: memref<1x32xf32, #tpu.memory_space<vmem>>, %arg9: memref<1x1xf32, #tpu.memory_space<vmem>>, %arg10: memref<1x1xf32, #tpu.memory_space<vmem>>, %arg11: memref<1x1xf32, #tpu.memory_space<vmem>>, %arg12: memref<1x1xf32, #tpu.memory_space<vmem>>) attributes {dimension_semantics = [#tpu.dimension_semantics<arbitrary>], iteration_bounds = array<i64: 2>, scalar_prefetch = 0 : i64, scratch_operands = 3 : i64, tpu.core_type = #tpu.core_type<tc>, window_params = [{transform_indices = @transform_0, window_bounds = array<i64: 8, 1>}, {transform_indices = @transform_1, window_bounds = array<i64: 8, 1>}, {transform_indices = @transform_2, window_bounds = array<i64: 8, 1>}, {transform_indices = @transform_3, window_bounds = array<i64: 8, 1024>}, {transform_indices = @transform_4, window_bounds = array<i64: 8, 1024>}, {pipeline_mode = #tpu.pipeline_mode<synchronous>, transform_indices = @transform_5, window_bounds = array<i64: 1024, 32>}, {pipeline_mode = #tpu.pipeline_mode<synchronous>, transform_indices = @transform_6, window_bounds = array<i64: 1, 32>}, {pipeline_mode = #tpu.pipeline_mode<synchronous>, transform_indices = @transform_7, window_bounds = array<i64: 1, 32>}, {pipeline_mode = #tpu.pipeline_mode<synchronous>, transform_indices = @transform_8, window_bounds = array<i64: 1, 1>}]} {
    %c0_i32 = arith.constant 0 : i32
    %0 = arith.cmpi eq, %arg0, %c0_i32 : i32
    %1 = arith.extui %0 : i1 to i32
    %c0_i32_0 = arith.constant 0 : i32
    %2 = arith.cmpi ne, %1, %c0_i32_0 : i32
    scf.if %2 {
      %cst_39 = arith.constant 0.000000e+00 : f32
      %65 = vector.broadcast %cst_39 : f32 to vector<1x1xf32>
      %c0_40 = arith.constant 0 : index
      %c0_41 = arith.constant 0 : index
      %66 = vector.load %arg10[%c0_40, %c0_41] : memref<1x1xf32, #tpu.memory_space<vmem>>, vector<1x1xf32>
      tpu.vector_store %arg10[%c0_40, %c0_41], %65 {strides = array<i32>} : memref<1x1xf32, #tpu.memory_space<vmem>>, vector<1x1xf32>,
      %cst_42 = arith.constant 0.000000e+00 : f32
      %67 = vector.broadcast %cst_42 : f32 to vector<1x1xf32>
      %c0_43 = arith.constant 0 : index
      %c0_44 = arith.constant 0 : index
      %68 = vector.load %arg11[%c0_43, %c0_44] : memref<1x1xf32, #tpu.memory_space<vmem>>, vector<1x1xf32>
      tpu.vector_store %arg11[%c0_43, %c0_44], %67 {strides = array<i32>} : memref<1x1xf32, #tpu.memory_space<vmem>>, vector<1x1xf32>,
      %cst_45 = arith.constant 0.000000e+00 : f32
      %69 = vector.broadcast %cst_45 : f32 to vector<1x1xf32>
      %c0_46 = arith.constant 0 : index
      %c0_47 = arith.constant 0 : index
      %70 = vector.load %arg12[%c0_46, %c0_47] : memref<1x1xf32, #tpu.memory_space<vmem>>, vector<1x1xf32>
      tpu.vector_store %arg12[%c0_46, %c0_47], %69 {strides = array<i32>} : memref<1x1xf32, #tpu.memory_space<vmem>>, vector<1x1xf32>,
    } else {
    }
    %c0 = arith.constant 0 : index
    %c0_1 = arith.constant 0 : index
    %3 = vector.load %arg10[%c0, %c0_1] : memref<1x1xf32, #tpu.memory_space<vmem>>, vector<1x1xf32>
    %c0_2 = arith.constant 0 : index
    %c0_3 = arith.constant 0 : index
    %4 = vector.load %arg1[%c0_2, %c0_3] : memref<8x1xf32, #tpu.memory_space<vmem>>, vector<8x1xf32>
    %5 = vector.shape_cast %4 : vector<8x1xf32> to vector<1x8x1xf32>
    %cst = arith.constant dense<0.000000e+00> : vector<1xf32>
    %6 = vector.multi_reduction <add>, %5, %cst [1, 2] : vector<1x8x1xf32> to vector<1xf32>
    %7 = vector.shape_cast %6 : vector<1xf32> to vector<1x1x1xf32>
    %8 = vector.extract %7[0, 0, 0] : f32 from vector<1x1x1xf32>
    %9 = vector.broadcast %8 : f32 to vector<1x1xf32>
    %10 = arith.addf %3, %9 : vector<1x1xf32>
    %c0_4 = arith.constant 0 : index
    %c0_5 = arith.constant 0 : index
    %11 = vector.load %arg10[%c0_4, %c0_5] : memref<1x1xf32, #tpu.memory_space<vmem>>, vector<1x1xf32>
    tpu.vector_store %arg10[%c0_4, %c0_5], %10 {strides = array<i32>} : memref<1x1xf32, #tpu.memory_space<vmem>>, vector<1x1xf32>,
    %c0_6 = arith.constant 0 : index
    %c0_7 = arith.constant 0 : index
    %12 = vector.load %arg11[%c0_6, %c0_7] : memref<1x1xf32, #tpu.memory_space<vmem>>, vector<1x1xf32>
    %c0_8 = arith.constant 0 : index
    %c0_9 = arith.constant 0 : index
    %13 = vector.load %arg2[%c0_8, %c0_9] : memref<8x1xf32, #tpu.memory_space<vmem>>, vector<8x1xf32>
    %14 = vector.shape_cast %13 : vector<8x1xf32> to vector<1x8x1xf32>
    %cst_10 = arith.constant dense<0.000000e+00> : vector<1xf32>
    %15 = vector.multi_reduction <add>, %14, %cst_10 [1, 2] : vector<1x8x1xf32> to vector<1xf32>
    %16 = vector.shape_cast %15 : vector<1xf32> to vector<1x1x1xf32>
    %17 = vector.extract %16[0, 0, 0] : f32 from vector<1x1x1xf32>
    %18 = vector.broadcast %17 : f32 to vector<1x1xf32>
    %19 = arith.addf %12, %18 : vector<1x1xf32>
    %c0_11 = arith.constant 0 : index
    %c0_12 = arith.constant 0 : index
    %20 = vector.load %arg11[%c0_11, %c0_12] : memref<1x1xf32, #tpu.memory_space<vmem>>, vector<1x1xf32>
    tpu.vector_store %arg11[%c0_11, %c0_12], %19 {strides = array<i32>} : memref<1x1xf32, #tpu.memory_space<vmem>>, vector<1x1xf32>,
    %c0_13 = arith.constant 0 : index
    %c0_14 = arith.constant 0 : index
    %21 = vector.load %arg3[%c0_13, %c0_14] : memref<8x1xf32, #tpu.memory_space<vmem>>, vector<8x1xf32>
    %c0_15 = arith.constant 0 : index
    %c0_16 = arith.constant 0 : index
    %22 = vector.load %arg4[%c0_15, %c0_16] : memref<8x1024xbf16, #tpu.memory_space<vmem>>, vector<8x1024xbf16>
    %23 = arith.extf %22 : vector<8x1024xbf16> to vector<8x1024xf32>
    %c0_17 = arith.constant 0 : index
    %c0_18 = arith.constant 0 : index
    %24 = vector.load %arg5[%c0_17, %c0_18] : memref<8x1024xbf16, #tpu.memory_space<vmem>>, vector<8x1024xbf16>
    %25 = arith.extf %24 : vector<8x1024xbf16> to vector<8x1024xf32>
    %26 = vector.broadcast %21 : vector<8x1xf32> to vector<8x1024xf32>
    %27 = arith.mulf %26, %23 : vector<8x1024xf32>
    %cst_19 = arith.constant 1.000000e+00 : f32
    %28 = vector.broadcast %cst_19 : f32 to vector<8x1xf32>
    %29 = arith.subf %28, %21 : vector<8x1xf32>
    %30 = vector.broadcast %29 : vector<8x1xf32> to vector<8x1024xf32>
    %31 = arith.mulf %30, %25 : vector<8x1024xf32>
    %32 = arith.addf %27, %31 : vector<8x1024xf32>
    %c0_20 = arith.constant 0 : index
    %c0_21 = arith.constant 0 : index
    %33 = vector.load %arg6[%c0_20, %c0_21] : memref<1024x32xf32, #tpu.memory_space<vmem>>, vector<1024x32xf32>
    %cst_22 = arith.constant dense<0.000000e+00> : vector<8x32xf32>
    %34 = tpu.matmul %32, %33, %cst_22 {dimension_numbers = #tpu.dot_dimension_numbers<[1], [0], [0], [1], [0, 0, 1, 1], [], []>} : vector<8x1024xf32>, vector<1024x32xf32>, vector<8x32xf32> -> vector<8x32xf32>
    %c0_23 = arith.constant 0 : index
    %c0_24 = arith.constant 0 : index
    %35 = vector.load %arg7[%c0_23, %c0_24] : memref<1x32xf32, #tpu.memory_space<vmem>>, vector<1x32xf32>
    %36 = vector.broadcast %35 : vector<1x32xf32> to vector<8x32xf32>
    %37 = arith.addf %34, %36 : vector<8x32xf32>
    %cst_25 = arith.constant 0.000000e+00 : f32
    %38 = vector.broadcast %cst_25 : f32 to vector<8x32xf32>
    %39 = arith.cmpf ogt, %37, %38 : vector<8x32xf32>
    %40 = arith.extui %39 : vector<8x32xi1> to vector<8x32xi32>
    %41 = arith.sitofp %40 : vector<8x32xi32> to vector<8x32xf32>
    %c0_26 = arith.constant 0 : index
    %c0_27 = arith.constant 0 : index
    %42 = vector.load %arg8[%c0_26, %c0_27] : memref<1x32xf32, #tpu.memory_space<vmem>>, vector<1x32xf32>
    %43 = vector.broadcast %42 : vector<1x32xf32> to vector<8x32xf32>
    %44 = arith.mulf %41, %43 : vector<8x32xf32>
    %c0_28 = arith.constant 0 : index
    %c0_29 = arith.constant 0 : index
    %45 = vector.load %arg6[%c0_28, %c0_29] : memref<1024x32xf32, #tpu.memory_space<vmem>>, vector<1024x32xf32>
    %cst_30 = arith.constant dense<0.000000e+00> : vector<8x1024xf32>
    %46 = tpu.matmul %44, %45, %cst_30 {dimension_numbers = #tpu.dot_dimension_numbers<[1], [1], [0], [0], [0, 0, 1, 0], [], []>} : vector<8x32xf32>, vector<1024x32xf32>, vector<8x1024xf32> -> vector<8x1024xf32>
    %47 = arith.mulf %46, %46 : vector<8x1024xf32>
    %cst_31 = arith.constant dense<0.000000e+00> : vector<8xf32>
    %48 = vector.multi_reduction <add>, %47, %cst_31 [1] : vector<8x1024xf32> to vector<8xf32>
    %49 = vector.shape_cast %48 : vector<8xf32> to vector<8x1xf32>
    %50 = math.sqrt %49 : vector<8x1xf32>
    %c0_32 = arith.constant 0 : index
    %c0_33 = arith.constant 0 : index
    %51 = vector.load %arg12[%c0_32, %c0_33] : memref<1x1xf32, #tpu.memory_space<vmem>>, vector<1x1xf32>
    %cst_34 = arith.constant 1.000000e+00 : f32
    %52 = vector.broadcast %cst_34 : f32 to vector<8x1xf32>
    %53 = arith.subf %50, %52 : vector<8x1xf32>
    %54 = arith.mulf %53, %53 : vector<8x1xf32>
    %55 = vector.shape_cast %54 : vector<8x1xf32> to vector<1x8x1xf32>
    %cst_35 = arith.constant dense<0.000000e+00> : vector<1xf32>
    %56 = vector.multi_reduction <add>, %55, %cst_35 [1, 2] : vector<1x8x1xf32> to vector<1xf32>
    %57 = vector.shape_cast %56 : vector<1xf32> to vector<1x1x1xf32>
    %58 = vector.extract %57[0, 0, 0] : f32 from vector<1x1x1xf32>
    %59 = vector.broadcast %58 : f32 to vector<1x1xf32>
    %60 = arith.addf %51, %59 : vector<1x1xf32>
    %c0_36 = arith.constant 0 : index
    %c0_37 = arith.constant 0 : index
    %61 = vector.load %arg12[%c0_36, %c0_37] : memref<1x1xf32, #tpu.memory_space<vmem>>, vector<1x1xf32>
    tpu.vector_store %arg12[%c0_36, %c0_37], %60 {strides = array<i32>} : memref<1x1xf32, #tpu.memory_space<vmem>>, vector<1x1xf32>,
    %c1_i32 = arith.constant 1 : i32
    %62 = arith.cmpi eq, %arg0, %c1_i32 : i32
    %63 = arith.extui %62 : i1 to i32
    %c0_i32_38 = arith.constant 0 : i32
    %64 = arith.cmpi ne, %63, %c0_i32_38 : i32
    scf.if %64 {
      %c0_39 = arith.constant 0 : index
      %c0_40 = arith.constant 0 : index
      %65 = vector.load %arg11[%c0_39, %c0_40] : memref<1x1xf32, #tpu.memory_space<vmem>>, vector<1x1xf32>
      %c0_41 = arith.constant 0 : index
      %c0_42 = arith.constant 0 : index
      %66 = vector.load %arg10[%c0_41, %c0_42] : memref<1x1xf32, #tpu.memory_space<vmem>>, vector<1x1xf32>
      %67 = arith.subf %65, %66 : vector<1x1xf32>
      %cst_43 = arith.constant 6.250000e-02 : f32
      %68 = vector.broadcast %cst_43 : f32 to vector<1x1xf32>
      %69 = arith.mulf %67, %68 : vector<1x1xf32>
      %c0_44 = arith.constant 0 : index
      %c0_45 = arith.constant 0 : index
      %70 = vector.load %arg12[%c0_44, %c0_45] : memref<1x1xf32, #tpu.memory_space<vmem>>, vector<1x1xf32>
      %cst_46 = arith.constant 6.250000e-01 : f32
      %71 = vector.broadcast %cst_46 : f32 to vector<1x1xf32>
      %72 = arith.mulf %70, %71 : vector<1x1xf32>
      %73 = arith.addf %69, %72 : vector<1x1xf32>
      %c0_47 = arith.constant 0 : index
      %c0_48 = arith.constant 0 : index
      %74 = vector.load %arg9[%c0_47, %c0_48] : memref<1x1xf32, #tpu.memory_space<vmem>>, vector<1x1xf32>
      tpu.vector_store %arg9[%c0_47, %c0_48], %73 {strides = array<i32>} : memref<1x1xf32, #tpu.memory_space<vmem>>, vector<1x1xf32>,
    } else {
    }
    return
  }
  func.func @transform_0(%arg0: i32) -> (i32, i32) {
    %c0_i32 = arith.constant 0 : i32
    %c0_i32_0 = arith.constant 0 : i32
    return %arg0, %c0_i32 : i32, i32
  }
  func.func @transform_1(%arg0: i32) -> (i32, i32) {
    %c0_i32 = arith.constant 0 : i32
    %c0_i32_0 = arith.constant 0 : i32
    return %arg0, %c0_i32 : i32, i32
  }
  func.func @transform_2(%arg0: i32) -> (i32, i32) {
    %c0_i32 = arith.constant 0 : i32
    %c0_i32_0 = arith.constant 0 : i32
    return %arg0, %c0_i32 : i32, i32
  }
  func.func @transform_3(%arg0: i32) -> (i32, i32) {
    %c0_i32 = arith.constant 0 : i32
    %c0_i32_0 = arith.constant 0 : i32
    return %arg0, %c0_i32 : i32, i32
  }
  func.func @transform_4(%arg0: i32) -> (i32, i32) {
    %c0_i32 = arith.constant 0 : i32
    %c0_i32_0 = arith.constant 0 : i32
    return %arg0, %c0_i32 : i32, i32
  }
  func.func @transform_5(%arg0: i32) -> (i32, i32) {
    %c0_i32 = arith.constant 0 : i32
    %c0_i32_0 = arith.constant 0 : i32
    %c0_i32_1 = arith.constant 0 : i32
    return %c0_i32, %c0_i32_0 : i32, i32
  }
  func.func @transform_6(%arg0: i32) -> (i32, i32) {
    %c0_i32 = arith.constant 0 : i32
    %c0_i32_0 = arith.constant 0 : i32
    %c0_i32_1 = arith.constant 0 : i32
    return %c0_i32, %c0_i32_0 : i32, i32
  }
  func.func @transform_7(%arg0: i32) -> (i32, i32) {
    %c0_i32 = arith.constant 0 : i32
    %c0_i32_0 = arith.constant 0 : i32
    %c0_i32_1 = arith.constant 0 : i32
    return %c0_i32, %c0_i32_0 : i32, i32
  }
  func.func @transform_8(%arg0: i32) -> (i32, i32) {
    %c0_i32 = arith.constant 0 : i32
    %c0_i32_0 = arith.constant 0 : i32
    %c0_i32_1 = arith.constant 0 : i32
    return %c0_i32, %c0_i32_0 : i32, i32
  }
}

</mosaic_0001>

<bundles_post_ra>
// kernel: tpu_custom_call.1
= control target key start
LH: loop header
LB: loop body
LE: loop exit
PB: predicated region body
PF: predicated region fallthrough
CT: control target
= control target key end

     0   :  { %13 = vsyncpa [#allocation6], 0  ;;  %s2572_s27 = smov 0   ;;  %s3485_s0 = inlined_call_operand.vmem [shape: f32[16,1], index: 0, kind: input, shape index: {}]   ;;  %s3486_s1 = inlined_call_operand.vmem [shape: f32[16,1], index: 1, kind: input, shape index: {}]   ;;  %s3487_s2 = inlined_call_operand.vmem [shape: f32[16,1], index: 2, kind: input, shape index: {}]   ;;  %s3488_s3 = inlined_call_operand.vmem [shape: bf16[16,1024], index: 3, kind: input, shape index: {}]   ;;  %s3489_s4 = inlined_call_operand.vmem [shape: bf16[16,1024], index: 4, kind: input, shape index: {}]   ;;  %s3490_s5 = inlined_call_operand.vmem [shape: f32[1024,32], index: 5, kind: input, shape index: {}]   ;;  %s3491_s6 = inlined_call_operand.vmem [shape: f32[1,32], index: 6, kind: input, shape index: {}]   ;;  %s3492_s7 = inlined_call_operand.vmem [shape: f32[1,32], index: 7, kind: input, shape index: {}]   ;;  %s3493_s8 = inlined_call_operand.hbm [shape: f32[1,1], index: 8, kind: output, shape index: {}]  }
   0x1 LB: > { %s2578_s28 = sadd.s32 4294967295, %s2521_s27   ;;  %p1710_p0 = scmp.ge.s32.totalorder %s2521_s27, 1  ;;  %s2521_s27 = sphi %s2572_s27, %s19_s27  }
   0x2   : > { %p295_p1 = scmp.lt.s32.totalorder %s2521_s27, 3 }
   0x4   : > { %p296_p2 = pnand %p1710_p0, %p295_p1 }
   0x6   : > { %299 = sbr.rel (%p296_p2) target bundleno = 1111 (0x457), region = 52 }
   0xd   : > { %p341_p3 = scmp.lt.s32.totalorder %s2578_s28, 1  ;;  %p1718_p4 = scmp.ne.s32.totalorder %s2578_s28, 0 }
   0xe   : > { %vm367_vm0 = vcmask (!%p1718_p4), 0   ;;  %v2523_v0 = vmov (!%p1718_p4), 0.0  }
   0xf   : > { %s342_s29 = scalar_select %p341_p3, %s2578_s28, 1 }
  0x10   : > { %366 = sbr.rel (%p1718_p4) target bundleno = 23 (0x17), region = 56  ;;  %368 = vst.msk [vmem:[#allocation2] sm:$0x1] (!%p1718_p4), %vm367_vm0, %v2523_v0  ;;  %369 = vst.msk [vmem:[#allocation3] sm:$0x1] (!%p1718_p4), %vm367_vm0, %v2523_v0 }
  0x11   : > { %s2584_s30 = sshll.u32 %s342_s29, 3  ;;  %s1860_s9 = sshll.u32 %s342_s29, 5  ;;  %370 = vst.msk [vmem:[#allocation4] sm:$0x1] (!%p1718_p4), %vm367_vm0, %v2523_v0 }
  0x12   : > { %s344_s12 = scalar_lea.vmem %s3485_s0, %s2584_s30  ;;  %s348_s15 = scalar_lea.vmem %s3486_s1, %s2584_s30 }
  0x13   : > { %s352_s18 = scalar_lea.vmem %s3487_s2, %s2584_s30  ;;  %s2601_s21 = scalar_lea.vmem %s3488_s3, %s1860_s9 }
  0x14   : > { %s2606_s24 = scalar_lea.vmem %s3489_s4, %s1860_s9 }
  0x17 PF: > { %v403_v1 = vld [vmem:[%s352_s18] sm:$0xff]  ;;  %v480_v3 = vld [vmem:[%s3490_s5 + $0x88] sm:$0xff]  ;;  %v2524_v4 = vmov 0   ;;  %v481_v16 = vld [vmem:[%s3490_s5 + $0x90] sm:$0xff]  ;;  %vm889_vm1 = vcmask 261120   ;;  %vm373_vm4 = vcmask 7168  }
  0x18   : > { %v479_v2 = vld [vmem:[%s3490_s5 + $0x80] sm:$0xff]  ;;  %2482 = vset.pattern.permute.xlu0 %v2524_v4  ;;  %v512_v7 = vld [vmem:[%s3490_s5 + $0x188] sm:$0xff]  ;;  %v441_v9 = vsub.f32 1.0, %v403_v1  ;;  %v482_v17 = vld [vmem:[%s3490_s5 + $0x98] sm:$0xff]  ;;  %vm386_vm7 = vcmask 0   ;;  %p1855_p5 = scmp.ne.s32.totalorder %s2578_s28, 1 }
  0x19   : > { %v2615_v5 = vpack.c.bf16 %v480_v3, %v479_v2  ;;  %v511_v6 = vld [vmem:[%s3490_s5 + $0x180] sm:$0xff]  ;;  %430 = vperm.xlu0 %2482, %v403_v1   ;;  %v464_v11 = vld [vmem:[%s3490_s5 + $0x8] sm:$0xff]  ;;  %v513_v18 = vld [vmem:[%s3490_s5 + $0x190] sm:$0xff]  ;;  %v2652_v19 = vpack.c.bf16 %v482_v17, %v481_v16 }
  0x1a   : > { %v463_v8 = vld [vmem:[%s3490_s5] sm:$0xff]  ;;  %v2626_v10 = vpack.c.bf16 %v512_v7, %v511_v6  ;;  %v496_v13 = vld [vmem:[%s3490_s5 + $0x108] sm:$0xff]  ;;  %v514_v20 = vld [vmem:[%s3490_s5 + $0x198] sm:$0xff] }
  0x1b   : > { %v495_v12 = vld [vmem:[%s3490_s5 + $0x100] sm:$0xff]  ;;  %2139 = vmatprep.subr.bf16.mxu0 %v2615_v5  ;;  %v2638_v14 = vpack.c.bf16 %v464_v11, %v463_v8  ;;  %v465_v21 = vld [vmem:[%s3490_s5 + $0x10] sm:$0xff]  ;;  %v466_v22 = vld [vmem:[%s3490_s5 + $0x18] sm:$0xff]  ;;  %v2665_v23 = vpack.c.bf16 %v514_v20, %v513_v18 }
  0x1c   : > { %v2640_v15 = vpack.c.bf16 %v496_v13, %v495_v12  ;;  %2171 = vmatprep.subr.bf16.mxu1 %v2626_v10  ;;  %v2667_v24 = vpack.c.bf16 %v466_v22, %v465_v21  ;;  %v497_v25 = vld [vmem:[%s3490_s5 + $0x110] sm:$0xff]  ;;  %v498_v26 = vld [vmem:[%s3490_s5 + $0x118] sm:$0xff]  ;;  %v483_v27 = vld [vmem:[%s3490_s5 + $0xa0] sm:$0xff] }
  0x1d   : > { %2141 = vmatpush3.bf16.msra.mxu0 %v2638_v14  ;;  %444 = vperm.xlu0 %2482, %v441_v9   ;;  %v2679_v28 = vpack.c.bf16 %v498_v26, %v497_v25  ;;  %v484_v29 = vld [vmem:[%s3490_s5 + $0xa8] sm:$0xff]  ;;  %v515_v30 = vld [vmem:[%s3490_s5 + $0x1a0] sm:$0xff]  ;;  %v485_v38 = vld [vmem:[%s3490_s5 + $0xb0] sm:$0xff] }
  0x1e   : > { %2173 = vmatpush3.bf16.msra.mxu1 %v2640_v15  ;;  %2143 = vmatprep.subr.bf16.mxu0 %v2652_v19  ;;  %v516_v31 = vld [vmem:[%s3490_s5 + $0x1a8] sm:$0xff]  ;;  %v2691_v32 = vpack.c.bf16 %v484_v29, %v483_v27  ;;  %v467_v34 = vld [vmem:[%s3490_s5 + $0x20] sm:$0xff]  ;;  %v486_v39 = vld [vmem:[%s3490_s5 + $0xb8] sm:$0xff] }
  0x1f   : > { %2175 = vmatprep.subr.bf16.mxu1 %v2665_v23  ;;  %v2693_v33 = vpack.c.bf16 %v516_v31, %v515_v30  ;;  %v468_v35 = vld [vmem:[%s3490_s5 + $0x28] sm:$0xff]  ;;  %v499_v36 = vld [vmem:[%s3490_s5 + $0x120] sm:$0xff]  ;;  %v517_v42 = vld [vmem:[%s3490_s5 + $0x1b0] sm:$0xff]  ;;  %v2730_v45 = vpack.c.bf16 %v486_v39, %v485_v38 }
  0x20   : > { %v500_v37 = vld [vmem:[%s3490_s5 + $0x128] sm:$0xff]  ;;  %v2715_v40 = vpack.c.bf16 %v468_v35, %v467_v34  ;;  %v518_v43 = vld [vmem:[%s3490_s5 + $0x1b8] sm:$0xff]  ;;  %v469_v44 = vld [vmem:[%s3490_s5 + $0x30] sm:$0xff] }
  0x21   : > { %2145 = vmatpush3.bf16.msra.mxu0 %v2667_v24  ;;  %v2717_v41 = vpack.c.bf16 %v500_v37, %v499_v36  ;;  %v2732_v46 = vpack.c.bf16 %v518_v43, %v517_v42  ;;  %v470_v47 = vld [vmem:[%s3490_s5 + $0x38] sm:$0xff]  ;;  %v501_v48 = vld [vmem:[%s3490_s5 + $0x130] sm:$0xff]  ;;  %v487_v50 = vld [vmem:[%s3490_s5 + $0xc0] sm:$0xff] }
  0x22   : > { %2177 = vmatpush3.bf16.msra.mxu1 %v2679_v28  ;;  %2147 = vmatprep.subr.bf16.mxu0 %v2691_v32  ;;  %v502_v49 = vld [vmem:[%s3490_s5 + $0x138] sm:$0xff]  ;;  %v488_v51 = vld [vmem:[%s3490_s5 + $0xc8] sm:$0xff]  ;;  %v519_v52 = vld [vmem:[%s3490_s5 + $0x1c0] sm:$0xff]  ;;  %v2757_v54 = vpack.c.bf16 %v470_v47, %v469_v44 }
  0x23   : > { %2179 = vmatprep.subr.bf16.mxu1 %v2693_v33  ;;  %v520_v53 = vld [vmem:[%s3490_s5 + $0x1c8] sm:$0xff]  ;;  %v2759_v55 = vpack.c.bf16 %v502_v49, %v501_v48  ;;  %v471_v56 = vld [vmem:[%s3490_s5 + $0x40] sm:$0xff]  ;;  %v2769_v58 = vpack.c.bf16 %v488_v51, %v487_v50  ;;  %v489_v62 = vld [vmem:[%s3490_s5 + $0xd0] sm:$0xff] }
  0x24   : > { %v472_v57 = vld [vmem:[%s3490_s5 + $0x48] sm:$0xff]  ;;  %v2771_v59 = vpack.c.bf16 %v520_v53, %v519_v52  ;;  %v503_v60 = vld [vmem:[%s3490_s5 + $0x140] sm:$0xff]  ;;  %v490_v63 = vld [vmem:[%s3490_s5 + $0xd8] sm:$0xff] }
  0x25   : > { %2149 = vmatpush3.bf16.msra.mxu0 %v2715_v40  ;;  %v504_v61 = vld [vmem:[%s3490_s5 + $0x148] sm:$0xff]  ;;  %v521_v0 = vld [vmem:[%s3490_s5 + $0x1d0] sm:$0xff]  ;;  %v522_v1 = vld [vmem:[%s3490_s5 + $0x1d8] sm:$0xff]  ;;  %v2793_v2 = vpack.c.bf16 %v472_v57, %v471_v56  ;;  %v2805_v7 = vpack.c.bf16 %v490_v63, %v489_v62 }
  0x26   : > { %2181 = vmatpush3.bf16.msra.mxu1 %v2717_v41  ;;  %2151 = vmatprep.subr.bf16.mxu0 %v2730_v45  ;;  %v2795_v3 = vpack.c.bf16 %v504_v61, %v503_v60  ;;  %v473_v4 = vld [vmem:[%s3490_s5 + $0x50] sm:$0xff]  ;;  %v474_v6 = vld [vmem:[%s3490_s5 + $0x58] sm:$0xff]  ;;  %v2807_v8 = vpack.c.bf16 %v522_v1, %v521_v0  ;;  %v491_v12 = vld [vmem:[%s3490_s5 + $0xe0] sm:$0xff] }
  0x27   : > { %2183 = vmatprep.subr.bf16.mxu1 %v2732_v46  ;;  %v505_v9 = vld [vmem:[%s3490_s5 + $0x150] sm:$0xff]  ;;  %v506_v11 = vld [vmem:[%s3490_s5 + $0x158] sm:$0xff]  ;;  %v492_v13 = vld [vmem:[%s3490_s5 + $0xe8] sm:$0xff]  ;;  %v2829_v18 = vpack.c.bf16 %v474_v6, %v473_v4 }
  0x28   : > { %v523_v16 = vld [vmem:[%s3490_s5 + $0x1e0] sm:$0xff]  ;;  %v524_v17 = vld [vmem:[%s3490_s5 + $0x1e8] sm:$0xff]  ;;  %v2831_v20 = vpack.c.bf16 %v506_v11, %v505_v9  ;;  %v2841_v25 = vpack.c.bf16 %v492_v13, %v491_v12  ;;  %v493_v30 = vld [vmem:[%s3490_s5 + $0xf0] sm:$0xff] }
  0x29   : > { %2153 = vmatpush3.bf16.msra.mxu0 %v2757_v54  ;;  %v475_v21 = vld [vmem:[%s3490_s5 + $0x60] sm:$0xff]  ;;  %v476_v22 = vld [vmem:[%s3490_s5 + $0x68] sm:$0xff]  ;;  %v2843_v26 = vpack.c.bf16 %v524_v17, %v523_v16  ;;  %v494_v31 = vld [vmem:[%s3490_s5 + $0xf8] sm:$0xff] }
  0x2a   : > { %2185 = vmatpush3.bf16.msra.mxu1 %v2759_v55  ;;  %2155 = vmatprep.subr.bf16.mxu0 %v2769_v58  ;;  %v507_v27 = vld [vmem:[%s3490_s5 + $0x160] sm:$0xff]  ;;  %v508_v29 = vld [vmem:[%s3490_s5 + $0x168] sm:$0xff]  ;;  %v525_v34 = vld [vmem:[%s3490_s5 + $0x1f0] sm:$0xff]  ;;  %v2865_v36 = vpack.c.bf16 %v476_v22, %v475_v21  ;;  %v2877_v42 = vpack.c.bf16 %v494_v31, %v493_v30 }
  0x2b   : > { %2187 = vmatprep.subr.bf16.mxu1 %v2771_v59  ;;  %v526_v35 = vld [vmem:[%s3490_s5 + $0x1f8] sm:$0xff]  ;;  %v2867_v37 = vpack.c.bf16 %v508_v29, %v507_v27  ;;  %v477_v38 = vld [vmem:[%s3490_s5 + $0x70] sm:$0xff]  ;;  %v543_v48 = vld [vmem:[%s3490_s5 + $0x280] sm:$0xff] }
  0x2c   : > { %v478_v39 = vld [vmem:[%s3490_s5 + $0x78] sm:$0xff]  ;;  %v2879_v43 = vpack.c.bf16 %v526_v35, %v525_v34  ;;  %v509_v44 = vld [vmem:[%s3490_s5 + $0x170] sm:$0xff]  ;;  %v544_v49 = vld [vmem:[%s3490_s5 + $0x288] sm:$0xff] }
  0x2d   : > { %2157 = vmatpush3.bf16.msra.mxu0 %v2793_v2  ;;  %v510_v47 = vld [vmem:[%s3490_s5 + $0x178] sm:$0xff]  ;;  %v575_v50 = vld [vmem:[%s3490_s5 + $0x380] sm:$0xff]  ;;  %v576_v51 = vld [vmem:[%s3490_s5 + $0x388] sm:$0xff]  ;;  %v2901_v52 = vpack.c.bf16 %v478_v39, %v477_v38  ;;  %v2907_v56 = vpack.c.bf16 %v544_v49, %v543_v48 }
  0x2e   : > { %2189 = vmatpush3.bf16.msra.mxu1 %v2795_v3  ;;  %2159 = vmatprep.subr.bf16.mxu0 %v2805_v7  ;;  %v2903_v53 = vpack.c.bf16 %v510_v47, %v509_v44  ;;  %v2909_v57 = vpack.c.bf16 %v576_v51, %v575_v50  ;;  %v404_v60 = vld [vmem:[%s2601_s21] sm:$0xff]  ;;  %v405_v61 = vld [vmem:[%s2601_s21 + $0x8] sm:$0xff]  ;;  %v2920_v0 = vld [vmem:[%s2606_s24 + $0x10] sm:$0xff] }
  0x2f   : > { %2191 = vmatprep.subr.bf16.mxu1 %v2807_v8  ;;  %3510 = vst [vmem:[#allocation9_spill] sm:$0xff] %v2907_v56  ;;  %v416_v62 = vld [vmem:[%s2606_s24] sm:$0xff]  ;;  %v417_v63 = vld [vmem:[%s2606_s24 + $0x8] sm:$0xff]  ;;  %v2923_v1 = vld [vmem:[%s2606_s24 + $0x18] sm:$0xff]  ;;  %v408_v6 = vunpack.c.l.bf16 %v404_v60  ;;  %v409_v9 = vunpack.c.h.bf16 %v404_v60  ;;  %v410_v11 = vunpack.c.l.bf16 %v405_v61  ;;  %v411_v12 = vunpack.c.h.bf16 %v405_v61 }
  0x30   : > { %3509 = vst [vmem:[#allocation8_spill] sm:$0xff] %v2903_v53  ;;  %3511 = vst [vmem:[#allocation10_spill] sm:$0xff] %v2909_v57  ;;  %v2928_v13 = vld [vmem:[%s2601_s21 + $0x10] sm:$0xff]  ;;  %v2931_v16 = vld [vmem:[%s2601_s21 + $0x18] sm:$0xff]  ;;  %v420_v17 = vunpack.c.l.bf16 %v416_v62  ;;  %v421_v21 = vunpack.c.h.bf16 %v416_v62  ;;  %v422_v22 = vunpack.c.l.bf16 %v417_v63  ;;  %v423_v27 = vunpack.c.h.bf16 %v417_v63 }
  0x31   : > { %2161 = vmatpush3.bf16.msra.mxu0 %v2829_v18  ;;  %v527_v29 = vld [vmem:[%s3490_s5 + $0x200] sm:$0xff]  ;;  %v425_v30 = vunpack.c.h.bf16 %v2920_v0  ;;  %v427_v31 = vunpack.c.h.bf16 %v2923_v1  ;;  %v528_v34 = vld [vmem:[%s3490_s5 + $0x208] sm:$0xff]  ;;  %v413_v39 = vunpack.c.h.bf16 %v2928_v13  ;;  %v415_v44 = vunpack.c.h.bf16 %v2931_v16  ;;  %vm3227_vm2 = vmpackc.low %vm889_vm1, %vm889_vm1 }
  0x32   : > { %2193 = vmatpush3.bf16.msra.mxu1 %v2831_v20  ;;  %2163 = vmatprep.subr.bf16.mxu0 %v2841_v25  ;;  %v559_v35 = vld [vmem:[%s3490_s5 + $0x300] sm:$0xff]  ;;  %v560_v38 = vld [vmem:[%s3490_s5 + $0x308] sm:$0xff] }
  0x33   : > { %2195 = vmatprep.subr.bf16.mxu1 %v2843_v26 }
  0x35   : > { %2165 = vmatpush3.bf16.msra.mxu0 %v2865_v36 }
  0x36   : > { %2197 = vmatpush3.bf16.msra.mxu1 %v2867_v37  ;;  %2167 = vmatprep.subr.bf16.mxu0 %v2877_v42 }
  0x37   : > { %2199 = vmatprep.subr.bf16.mxu1 %v2879_v43 }
  0x39   : > { %2169 = vmatpush3.bf16.msra.mxu0 %v2901_v52 }
  0x3a   : > { %2201 = vmatpush3.bf16.msra.mxu1 %v2903_v53  ;;  %2203 = vmatprep.subr.bf16.mxu0 %v2907_v56  ;;  %v2962_v56 = vpack.c.bf16 %v528_v34, %v527_v29  ;;  %v561_v53 = vld [vmem:[%s3490_s5 + $0x310] sm:$0xff] }
  0x3b   : > { %2235 = vmatprep.subr.bf16.mxu1 %v2909_v57  ;;  %v545_v57 = vld [vmem:[%s3490_s5 + $0x290] sm:$0xff] }
  0x98   : > { %v2925_v4 = vpop.permute.xlu0 %430 }
  0x99   : > { %v434_v48 = vmul.f32 %v2925_v4, %v409_v9  ;;  %v436_v49 = vmul.f32 %v2925_v4, %v411_v12  ;;  %v433_v50 = vmul.f32 %v2925_v4, %v408_v6  ;;  %v435_v51 = vmul.f32 %v2925_v4, %v410_v11  ;;  %v546_v12 = vld [vmem:[%s3490_s5 + $0x298] sm:$0xff] }
  0x9a   : > { %v2964_v9 = vpack.c.bf16 %v560_v38, %v559_v35  ;;  %v438_v35 = vmul.f32 %v2925_v4, %v413_v39  ;;  %v440_v38 = vmul.f32 %v2925_v4, %v415_v44  ;;  %v548_v39 = vld [vmem:[%s3490_s5 + $0x2a8] sm:$0xff]  ;;  %v579_v44 = vld [vmem:[%s3490_s5 + $0x3a0] sm:$0xff] }
  0x9c   : > { %v2949_v47 = vpop.permute.xlu0 %444 }
  0x9d   : > { %v448_v60 = vmul.f32 %v2949_v47, %v421_v21  ;;  %v450_v61 = vmul.f32 %v2949_v47, %v423_v27  ;;  %v447_v62 = vmul.f32 %v2949_v47, %v420_v17  ;;  %v449_v63 = vmul.f32 %v2949_v47, %v422_v22  ;;  %v577_v17 = vld [vmem:[%s3490_s5 + $0x390] sm:$0xff]  ;;  %v578_v21 = vld [vmem:[%s3490_s5 + $0x398] sm:$0xff] }
  0x9e   : > { %v452_v6 = vmul.f32 %v2949_v47, %v425_v30  ;;  %v454_v11 = vmul.f32 %v2949_v47, %v427_v31  ;;  %v529_v30 = vld [vmem:[%s3490_s5 + $0x210] sm:$0xff]  ;;  %v530_v31 = vld [vmem:[%s3490_s5 + $0x218] sm:$0xff] }
  0x9f   : > { %v456_v22 = vadd.f32 %v448_v60, %v434_v48  ;;  %v458_v27 = vadd.f32 %v450_v61, %v436_v49  ;;  %v455_v29 = vadd.f32 %v447_v62, %v433_v50  ;;  %v457_v34 = vadd.f32 %v449_v63, %v435_v51  ;;  %v562_v48 = vld [vmem:[%s3490_s5 + $0x318] sm:$0xff]  ;;  %v547_v49 = vld [vmem:[%s3490_s5 + $0x2a0] sm:$0xff]  ;;  %v580_v60 = vld [vmem:[%s3490_s5 + $0x3a8] sm:$0xff] }
  0xa0   : > { %v2994_v50 = vpack.c.bf16 %v546_v12, %v545_v57  ;;  %v2996_v51 = vpack.c.bf16 %v578_v21, %v577_v17  ;;  %v460_v61 = vadd.f32 %v452_v6, %v438_v35  ;;  %v462_v62 = vadd.f32 %v454_v11, %v440_v38  ;;  %v531_v12 = vld [vmem:[%s3490_s5 + $0x220] sm:$0xff]  ;;  %v532_v17 = vld [vmem:[%s3490_s5 + $0x228] sm:$0xff]  ;;  %v533_v35 = vld [vmem:[%s3490_s5 + $0x230] sm:$0xff] }
  0xa1   : > { %662 = vmatprep.mubr.f32.mxu0 %v456_v22  ;;  %732 = vmatprep.mubr.f32.mxu1 %v458_v27  ;;  %v3009_v57 = vpack.c.bf16 %v530_v31, %v529_v30  ;;  %v3011_v63 = vpack.c.bf16 %v562_v48, %v561_v53  ;;  %v3019_v6 = vpack.c.bf16 %v548_v39, %v547_v49  ;;  %v563_v21 = vld [vmem:[%s3490_s5 + $0x320] sm:$0xff]  ;;  %v564_v53 = vld [vmem:[%s3490_s5 + $0x328] sm:$0xff]  ;;  %v549_v22 = vld [vmem:[%s3490_s5 + $0x2b0] sm:$0xff] }
  0xa2   : > { %663 = vmatmul.mubr.f32.vlgmr.msra.gmra.mrb[0].mxu0 %v455_v29  ;;  %733 = vmatmul.mubr.f32.vlgmr.msra.gmra.mrb[0].mxu1 %v457_v34  ;;  %v3021_v11 = vpack.c.bf16 %v580_v60, %v579_v44  ;;  %v550_v27 = vld [vmem:[%s3490_s5 + $0x2b8] sm:$0xff]  ;;  %v581_v29 = vld [vmem:[%s3490_s5 + $0x3b0] sm:$0xff]  ;;  %v3045_v30 = vpack.c.bf16 %v532_v17, %v531_v12  ;;  %v3047_v31 = vpack.c.bf16 %v564_v53, %v563_v21  ;;  %v551_v60 = vld [vmem:[%s3490_s5 + $0x2c0] sm:$0xff] }
  0xa3   : > { %2205 = vmatpush3.bf16.msra.mxu0 %v2962_v56  ;;  %2237 = vmatpush3.bf16.msra.mxu1 %v2964_v9  ;;  %v582_v34 = vld [vmem:[%s3490_s5 + $0x3b8] sm:$0xff]  ;;  %v3057_v48 = vpack.c.bf16 %v550_v27, %v549_v22  ;;  %v565_v39 = vld [vmem:[%s3490_s5 + $0x330] sm:$0xff]  ;;  %v584_v12 = vld [vmem:[%s3490_s5 + $0x3c8] sm:$0xff] }
  0xa4   : > { %802 = vmatprep.mubr.f32.mxu0 %v460_v61  ;;  %872 = vmatprep.mubr.f32.mxu1 %v462_v62  ;;  %3512 = vst [vmem:[#allocation11_spill] sm:$0xff] %v3047_v31  ;;  %v534_v38 = vld [vmem:[%s3490_s5 + $0x238] sm:$0xff]  ;;  %v3059_v49 = vpack.c.bf16 %v582_v34, %v581_v29  ;;  %v552_v61 = vld [vmem:[%s3490_s5 + $0x2c8] sm:$0xff]  ;;  %v583_v62 = vld [vmem:[%s3490_s5 + $0x3c0] sm:$0xff] }
  0xa5   : > { %2207 = vmatprep.subr.bf16.mxu0 %v2994_v50  ;;  %2239 = vmatprep.subr.bf16.mxu1 %v2996_v51  ;;  %3513 = vst [vmem:[#allocation12_spill] sm:$0xff] %v3057_v48  ;;  %v566_v44 = vld [vmem:[%s3490_s5 + $0x338] sm:$0xff]  ;;  %v3081_v17 = vpack.c.bf16 %v534_v38, %v533_v35  ;;  %v535_v53 = vld [vmem:[%s3490_s5 + $0x240] sm:$0xff]  ;;  %v536_v22 = vld [vmem:[%s3490_s5 + $0x248] sm:$0xff]  ;;  %v3093_v27 = vpack.c.bf16 %v552_v61, %v551_v60 }
  0xa6   : > { %3514 = vst [vmem:[#allocation13_spill] sm:$0xff] %v3059_v49  ;;  %v3083_v21 = vpack.c.bf16 %v566_v44, %v565_v39  ;;  %v3095_v29 = vpack.c.bf16 %v584_v12, %v583_v62  ;;  %v567_v34 = vld [vmem:[%s3490_s5 + $0x340] sm:$0xff]  ;;  %v568_v35 = vld [vmem:[%s3490_s5 + $0x348] sm:$0xff]  ;;  %v553_v38 = vld [vmem:[%s3490_s5 + $0x2d0] sm:$0xff]  ;;  %v3117_v61 = vpack.c.bf16 %v536_v22, %v535_v53 }
  0xa7   : > { %2209 = vmatpush3.bf16.msra.mxu0 %v3009_v57  ;;  %2241 = vmatpush3.bf16.msra.mxu1 %v3011_v63  ;;  %3515 = vst [vmem:[#allocation14_spill] sm:$0xff] %v3081_v17  ;;  %3517 = vst [vmem:[#allocation16_spill] sm:$0xff] %v3093_v27  ;;  %v554_v39 = vld [vmem:[%s3490_s5 + $0x2d8] sm:$0xff]  ;;  %v585_v44 = vld [vmem:[%s3490_s5 + $0x3d0] sm:$0xff]  ;;  %v3119_v62 = vpack.c.bf16 %v568_v35, %v567_v34 }
  0xa8   : > { %2211 = vmatprep.subr.bf16.mxu0 %v3019_v6  ;;  %2243 = vmatprep.subr.bf16.mxu1 %v3021_v11  ;;  %3516 = vst [vmem:[#allocation15_spill] sm:$0xff] %v3083_v21  ;;  %3518 = vst [vmem:[#allocation17_spill] sm:$0xff] %v3095_v29  ;;  %v586_v60 = vld [vmem:[%s3490_s5 + $0x3d8] sm:$0xff]  ;;  %v537_v12 = vld [vmem:[%s3490_s5 + $0x250] sm:$0xff] }
  0xa9   : > { %3519 = vst [vmem:[#allocation18_spill] sm:$0xff] %v3117_v61  ;;  %3520 = vst [vmem:[#allocation19_spill] sm:$0xff] %v3119_v62  ;;  %v569_v53 = vld [vmem:[%s3490_s5 + $0x350] sm:$0xff]  ;;  %v570_v22 = vld [vmem:[%s3490_s5 + $0x358] sm:$0xff] }
  0xaa   : > { %v555_v34 = vld [vmem:[%s3490_s5 + $0x2e0] sm:$0xff]  ;;  %v556_v35 = vld [vmem:[%s3490_s5 + $0x2e8] sm:$0xff] }
  0xab   : > { %2213 = vmatpush3.bf16.msra.mxu0 %v3045_v30  ;;  %2245 = vmatpush3.bf16.msra.mxu1 %v3047_v31 }
  0xac   : > { %2215 = vmatprep.subr.bf16.mxu0 %v3057_v48  ;;  %2247 = vmatprep.subr.bf16.mxu1 %v3059_v49  ;;  %v538_v49 = vld [vmem:[%s3490_s5 + $0x258] sm:$0xff]  ;;  %v3129_v48 = vpack.c.bf16 %v554_v39, %v553_v38  ;;  %v587_v38 = vld [vmem:[%s3490_s5 + $0x3e0] sm:$0xff]  ;;  %v588_v39 = vld [vmem:[%s3490_s5 + $0x3e8] sm:$0xff] }
  0xae   : > { %3521 = vst [vmem:[#allocation20_spill] sm:$0xff] %v3129_v48 }
  0xaf   : > { %2217 = vmatpush3.bf16.msra.mxu0 %v3081_v17  ;;  %2249 = vmatpush3.bf16.msra.mxu1 %v3083_v21  ;;  %v3131_v17 = vpack.c.bf16 %v586_v60, %v585_v44  ;;  %v3153_v44 = vpack.c.bf16 %v538_v49, %v537_v12  ;;  %v3155_v60 = vpack.c.bf16 %v570_v22, %v569_v53  ;;  %v571_v49 = vld [vmem:[%s3490_s5 + $0x360] sm:$0xff]  ;;  %v572_v12 = vld [vmem:[%s3490_s5 + $0x368] sm:$0xff]  ;;  %v557_v53 = vld [vmem:[%s3490_s5 + $0x2f0] sm:$0xff] }
  0xb0   : > { %2219 = vmatprep.subr.bf16.mxu0 %v3093_v27  ;;  %2251 = vmatprep.subr.bf16.mxu1 %v3095_v29  ;;  %v539_v29 = vld [vmem:[%s3490_s5 + $0x260] sm:$0xff]  ;;  %v540_v27 = vld [vmem:[%s3490_s5 + $0x268] sm:$0xff]  ;;  %v3165_v21 = vpack.c.bf16 %v556_v35, %v555_v34  ;;  %v558_v22 = vld [vmem:[%s3490_s5 + $0x2f8] sm:$0xff] }
  0xb1   : > { %3522 = vst [vmem:[#allocation21_spill] sm:$0xff] %v3131_v17  ;;  %3523 = vst [vmem:[#allocation22_spill] sm:$0xff] %v3153_v44  ;;  %v589_v34 = vld [vmem:[%s3490_s5 + $0x3f0] sm:$0xff]  ;;  %v590_v35 = vld [vmem:[%s3490_s5 + $0x3f8] sm:$0xff]  ;;  %v3200_v31 = vpack.c.bf16 %v558_v22, %v557_v53 }
  0xb3   : > { %2221 = vmatpush3.bf16.msra.mxu0 %v3117_v61  ;;  %2253 = vmatpush3.bf16.msra.mxu1 %v3119_v62  ;;  %v3167_v61 = vpack.c.bf16 %v588_v39, %v587_v38  ;;  %v3189_v38 = vpack.c.bf16 %v540_v27, %v539_v29  ;;  %v3191_v39 = vpack.c.bf16 %v572_v12, %v571_v49  ;;  %v426_v62 = vunpack.c.l.bf16 %v2923_v1  ;;  %v542_v27 = vld [vmem:[%s3490_s5 + $0x278] sm:$0xff]  ;;  %v573_v29 = vld [vmem:[%s3490_s5 + $0x370] sm:$0xff] }
  0xb4   : > { %2223 = vmatprep.subr.bf16.mxu0 %v3129_v48  ;;  %2255 = vmatprep.subr.bf16.mxu1 %v3131_v17  ;;  %v541_v17 = vld [vmem:[%s3490_s5 + $0x270] sm:$0xff]  ;;  %v424_v48 = vunpack.c.l.bf16 %v2920_v0  ;;  %v574_v0 = vld [vmem:[%s3490_s5 + $0x378] sm:$0xff]  ;;  %v412_v1 = vunpack.c.l.bf16 %v2928_v13  ;;  %v414_v49 = vunpack.c.l.bf16 %v2931_v16  ;;  %v372_v13 = vld [vmem:[%s344_s12] sm:$0xff] }
  0xb5   : > { %v3217_v12 = vpack.c.bf16 %v542_v27, %v541_v17  ;;  %v3219_v53 = vpack.c.bf16 %v574_v0, %v573_v29 }
  0xb6   : > { %v451_v22 = vmul.f32 %v2949_v47, %v424_v48  ;;  %v437_v16 = vmul.f32 %v2925_v4, %v412_v1  ;;  %v439_v17 = vmul.f32 %v2925_v4, %v414_v49  ;;  %v3537_v4 = vld [vmem:[#allocation19_spill] sm:$0xff] }
  0xb7   : > { %2225 = vmatpush3.bf16.msra.mxu0 %v3153_v44  ;;  %2257 = vmatpush3.bf16.msra.mxu1 %v3155_v60  ;;  %v3202_v44 = vpack.c.bf16 %v590_v35, %v589_v34  ;;  %v453_v34 = vmul.f32 %v2949_v47, %v426_v62  ;;  %v3538_v47 = vld [vmem:[#allocation20_spill] sm:$0xff] }
  0xb8   : > { %2227 = vmatprep.subr.bf16.mxu0 %v3165_v21  ;;  %2259 = vmatprep.subr.bf16.mxu1 %v3167_v61  ;;  %v459_v35 = vadd.f32 %v451_v22, %v437_v16  ;;  %v389_v16 = vld [vmem:[%s348_s15] sm:$0xff] }
  0xb9   : > { %v461_v27 = vadd.f32 %v453_v34, %v439_v17  ;;  %v374_v17 = vsel %vm373_vm4, %v372_v13, 0.0 }
  0xbb   : > { %2229 = vmatpush3.bf16.msra.mxu0 %v3189_v38  ;;  %2261 = vmatpush3.bf16.msra.mxu1 %v3191_v39 }
  0xbc   : > { %2231 = vmatprep.subr.bf16.mxu0 %v3200_v31  ;;  %2263 = vmatprep.subr.bf16.mxu1 %v3202_v44 }
  0xbf   : > { %2233 = vmatpush3.bf16.msra.mxu0 %v3217_v12  ;;  %2265 = vmatpush3.bf16.msra.mxu1 %v3219_v53 }
  0xc0   : > { %2268 = vmatprep.subr.msk.bf16.mxu0 %vm3227_vm2, %v2615_v5  ;;  %2316 = vmatprep.subr.msk.bf16.mxu1 %vm3227_vm2, %v2626_v10  ;;  %v3526_v5 = vld [vmem:[#allocation8_spill] sm:$0xff]  ;;  %v3527_v10 = vld [vmem:[#allocation9_spill] sm:$0xff] }
  0xc2   : > { %803 = vmatmul.mubr.f32.vlgmr.msra.gmra.mrb[2].mxu0 %v459_v35  ;;  %873 = vmatmul.mubr.f32.vlgmr.msra.gmra.mrb[2].mxu1 %v461_v27  ;;  %v390_v35 = vsel %vm373_vm4, %v389_v16, 0.0 }
  0xc3   : > { %391 = vadd.xlane.f32.xlu0 %v390_v35 }
  0xc8   : > { %2271 = vmatpush3.bf16.xpose.msk.msra.mxu0 %vm3227_vm2, %v2638_v14  ;;  %2319 = vmatpush3.bf16.xpose.msk.msra.mxu1 %vm3227_vm2, %v2640_v15  ;;  %v3528_v14 = vld [vmem:[#allocation10_spill] sm:$0xff] }
  0xc9   : > { %2274 = vmatprep.subr.msk.bf16.mxu0 %vm3227_vm2, %v2652_v19  ;;  %2322 = vmatprep.subr.msk.bf16.mxu1 %vm3227_vm2, %v2665_v23  ;;  %v1719_v23 = vld [vmem:[%s3491_s6] ss:$0 sm:$0xff] }
  0xd0   : > { %2277 = vmatpush3.bf16.xpose.msk.msra.mxu0 %vm3227_vm2, %v2667_v24  ;;  %2325 = vmatpush3.bf16.xpose.msk.msra.mxu1 %vm3227_vm2, %v2679_v28 }
  0xd1   : > { %2280 = vmatprep.subr.msk.bf16.mxu0 %vm3227_vm2, %v2691_v32  ;;  %2328 = vmatprep.subr.msk.bf16.mxu1 %vm3227_vm2, %v2693_v33 }
  0xd8   : > { %2283 = vmatpush3.bf16.xpose.msk.msra.mxu0 %vm3227_vm2, %v2715_v40  ;;  %2331 = vmatpush3.bf16.xpose.msk.msra.mxu1 %vm3227_vm2, %v2717_v41 }
  0xd9   : > { %2286 = vmatprep.subr.msk.bf16.mxu0 %vm3227_vm2, %v2730_v45  ;;  %2334 = vmatprep.subr.msk.bf16.mxu1 %vm3227_vm2, %v2732_v46 }
  0xe0   : > { %2289 = vmatpush3.bf16.xpose.msk.msra.mxu0 %vm3227_vm2, %v2757_v54  ;;  %2337 = vmatpush3.bf16.xpose.msk.msra.mxu1 %vm3227_vm2, %v2759_v55 }
  0xe1   : > { %2292 = vmatprep.subr.msk.bf16.mxu0 %vm3227_vm2, %v2769_v58  ;;  %2340 = vmatprep.subr.msk.bf16.mxu1 %vm3227_vm2, %v2771_v59 }
  0xe8   : > { %2295 = vmatpush3.bf16.xpose.msk.msra.mxu0 %vm3227_vm2, %v2793_v2  ;;  %2343 = vmatpush3.bf16.xpose.msk.msra.mxu1 %vm3227_vm2, %v2795_v3 }
  0xe9   : > { %2298 = vmatprep.subr.msk.bf16.mxu0 %vm3227_vm2, %v2805_v7  ;;  %2346 = vmatprep.subr.msk.bf16.mxu1 %vm3227_vm2, %v2807_v8  ;;  %v1721_v7 = vld [vmem:[%s3492_s7] ss:$0 sm:$0xff]  ;;  %v2525_v8 = vmov 0.0  }
  0xf0   : > { %2301 = vmatpush3.bf16.xpose.msk.msra.mxu0 %vm3227_vm2, %v2829_v18  ;;  %2349 = vmatpush3.bf16.xpose.msk.msra.mxu1 %vm3227_vm2, %v2831_v20 }
  0xf1   : > { %2304 = vmatprep.subr.msk.bf16.mxu0 %vm3227_vm2, %v2841_v25  ;;  %2352 = vmatprep.subr.msk.bf16.mxu1 %vm3227_vm2, %v2843_v26  ;;  %v3529_v25 = vld [vmem:[#allocation11_spill] sm:$0xff]  ;;  %v3530_v26 = vld [vmem:[#allocation12_spill] sm:$0xff] }
  0xf8   : > { %2307 = vmatpush3.bf16.xpose.msk.msra.mxu0 %vm3227_vm2, %v2865_v36  ;;  %2355 = vmatpush3.bf16.xpose.msk.msra.mxu1 %vm3227_vm2, %v2867_v37  ;;  %v3531_v36 = vld [vmem:[#allocation13_spill] sm:$0xff]  ;;  %v3532_v37 = vld [vmem:[#allocation14_spill] sm:$0xff] }
  0xf9   : > { %2310 = vmatprep.subr.msk.bf16.mxu0 %vm3227_vm2, %v2877_v42  ;;  %2358 = vmatprep.subr.msk.bf16.mxu1 %vm3227_vm2, %v2879_v43  ;;  %v3533_v42 = vld [vmem:[#allocation15_spill] sm:$0xff]  ;;  %v3534_v43 = vld [vmem:[#allocation16_spill] sm:$0xff] }
 0x100   : > { %2313 = vmatpush3.bf16.xpose.msk.msra.mxu0 %vm3227_vm2, %v2901_v52  ;;  %2361 = vmatpush3.bf16.xpose.msk.msra.mxu1 %vm3227_vm2, %v3526_v5  ;;  %v3535_v52 = vld [vmem:[#allocation17_spill] sm:$0xff] }
 0x101   : > { %2364 = vmatprep.subr.msk.bf16.mxu0 %vm3227_vm2, %v3527_v10  ;;  %2412 = vmatprep.subr.msk.bf16.mxu1 %vm3227_vm2, %v3528_v14 }
 0x175   : > { %v1894_v15 = vpop.f32.mrb[0].mxu0  ;;  %v1929_v19 = vpop.f32.mrb[0].mxu1 }
 0x176   : > { %v1895_v24 = vpop.f32.mrb[1].mxu0  ;;  %v1930_v28 = vpop.f32.mrb[1].mxu1 }
 0x177   : > { %v1896_v32 = vadd.f32 %v1895_v24, %v1894_v15  ;;  %v1931_v33 = vadd.f32 %v1930_v28, %v1929_v19 }
 0x179   : > { %v665_v40 = vadd.f32 %v1896_v32, %v1719_v23  ;;  %v392_v32 = vpop.xlane.xlu0 %391 }
 0x17b   : > { %v735_v41 = vadd.f32 %v1931_v33, %v665_v40 }
 0x195   : > { %v1964_v45 = vpop.f32.mrb[2].mxu0  ;;  %v1999_v46 = vpop.f32.mrb[2].mxu1 }
 0x196   : > { %v1965_v54 = vpop.f32.mrb[3].mxu0  ;;  %v2000_v55 = vpop.f32.mrb[3].mxu1 }
 0x197   : > { %v1966_v58 = vadd.f32 %v1965_v54, %v1964_v45  ;;  %v2001_v59 = vadd.f32 %v2000_v55, %v1999_v46 }
 0x199   : > { %v805_v2 = vadd.f32 %v1966_v58, %v735_v41  ;;  %v393_v41 = vrot.slane %v392_v32, 4 }
 0x19b   : > { %v875_v3 = vadd.f32 %v2001_v59, %v805_v2  ;;  %v394_v46 = vadd.f32 %v393_v41, %v392_v32 }
 0x19d   : > { %vm878_vm3 = vcmp.gt.f32.partialorder %v875_v3, 0.0  ;;  %v395_v55 = vrot.slane %v394_v46, 2 }
 0x19e   : > { %v1720_v18 = vsel %vm878_vm3, 1.0, %v2525_v8 }
 0x19f   : > { %v888_v20 = vmul.f32 %v1721_v7, %v1720_v18  ;;  %v396_v59 = vadd.f32 %v395_v55, %v394_v46  ;;  %v371_v18 = vld [vmem:[#allocation2] sm:$0x1] }
 0x1a1   : > { %2034 = vmatprep.mubr.msk.f32.mxu0 %vm889_vm1, %v888_v20  ;;  %2068 = vmatprep.mubr.msk.f32.mxu1 %vm889_vm1, %v888_v20  ;;  %v397_v7 = vrot.slane %v396_v59, 1 }
 0x1a2   : > { %2035 = vmatmul.mubr.msk.f32.vlgmr.msra.gmra.mrb[4].mxu0 %vm889_vm1, %v888_v20  ;;  %2069 = vmatmul.mubr.msk.f32.vlgmr.msra.gmra.mrb[4].mxu1 %vm889_vm1, %v888_v20 }
 0x1a3   : > { %2367 = vmatpush3.bf16.xpose.msk.msra.mxu0 %vm3227_vm2, %v2962_v56  ;;  %2415 = vmatpush3.bf16.xpose.msk.msra.mxu1 %vm3227_vm2, %v2964_v9  ;;  %v3536_v56 = vld [vmem:[#allocation18_spill] sm:$0xff]  ;;  %v3539_v9 = vld [vmem:[#allocation21_spill] sm:$0xff]  ;;  %v398_v8 = vadd.f32 %v397_v7, %v396_v59 }
 0x1a4   : > { %2102 = vmatprep.mubr.msk.f32.mxu0 %vm889_vm1, %v888_v20  ;;  %2136 = vmatprep.mubr.msk.f32.mxu1 %vm889_vm1, %v888_v20 }
 0x1a5   : > { %2370 = vmatprep.subr.msk.bf16.mxu0 %vm3227_vm2, %v2994_v50  ;;  %2418 = vmatprep.subr.msk.bf16.mxu1 %vm3227_vm2, %v2996_v51  ;;  %v3540_v50 = vld [vmem:[#allocation22_spill] sm:$0xff] }
 0x1ab   : > { %2373 = vmatpush3.bf16.xpose.msk.msra.mxu0 %vm3227_vm2, %v3009_v57  ;;  %2421 = vmatpush3.bf16.xpose.msk.msra.mxu1 %vm3227_vm2, %v3011_v63 }
 0x1ac   : > { %2376 = vmatprep.subr.msk.bf16.mxu0 %vm3227_vm2, %v3019_v6  ;;  %2424 = vmatprep.subr.msk.bf16.mxu1 %vm3227_vm2, %v3021_v11 }
 0x1b3   : > { %2379 = vmatpush3.bf16.xpose.msk.msra.mxu0 %vm3227_vm2, %v3045_v30  ;;  %2427 = vmatpush3.bf16.xpose.msk.msra.mxu1 %vm3227_vm2, %v3529_v25 }
 0x1b4   : > { %2382 = vmatprep.subr.msk.bf16.mxu0 %vm3227_vm2, %v3530_v26  ;;  %2430 = vmatprep.subr.msk.bf16.mxu1 %vm3227_vm2, %v3531_v36  ;;  %v388_v26 = vld [vmem:[#allocation3] sm:$0x1] }
 0x1bb   : > { %2385 = vmatpush3.bf16.xpose.msk.msra.mxu0 %vm3227_vm2, %v3532_v37  ;;  %2433 = vmatpush3.bf16.xpose.msk.msra.mxu1 %vm3227_vm2, %v3533_v42 }
 0x1bc   : > { %2388 = vmatprep.subr.msk.bf16.mxu0 %vm3227_vm2, %v3534_v43  ;;  %2436 = vmatprep.subr.msk.bf16.mxu1 %vm3227_vm2, %v3535_v52 }
 0x1c3   : > { %2391 = vmatpush3.bf16.xpose.msk.msra.mxu0 %vm3227_vm2, %v3536_v56  ;;  %2439 = vmatpush3.bf16.xpose.msk.msra.mxu1 %vm3227_vm2, %v3537_v4 }
 0x1c4   : > { %2394 = vmatprep.subr.msk.bf16.mxu0 %vm3227_vm2, %v3538_v47  ;;  %2442 = vmatprep.subr.msk.bf16.mxu1 %vm3227_vm2, %v3539_v9 }
 0x1cb   : > { %2397 = vmatpush3.bf16.xpose.msk.msra.mxu0 %vm3227_vm2, %v3540_v50  ;;  %2445 = vmatpush3.bf16.xpose.msk.msra.mxu1 %vm3227_vm2, %v3155_v60  ;;  %v1585_v50 = vld [vmem:[#allocation4] sm:$0x1] }
 0x1cc   : > { %2400 = vmatprep.subr.msk.bf16.mxu0 %vm3227_vm2, %v3165_v21  ;;  %2448 = vmatprep.subr.msk.bf16.mxu1 %vm3227_vm2, %v3167_v61 }
 0x1d3   : > { %2403 = vmatpush3.bf16.xpose.msk.msra.mxu0 %vm3227_vm2, %v3189_v38  ;;  %2451 = vmatpush3.bf16.xpose.msk.msra.mxu1 %vm3227_vm2, %v3191_v39 }
 0x1d4   : > { %2406 = vmatprep.subr.msk.bf16.mxu0 %vm3227_vm2, %v3200_v31  ;;  %2454 = vmatprep.subr.msk.bf16.mxu1 %vm3227_vm2, %v3202_v44 }
 0x1db   : > { %2409 = vmatpush3.bf16.xpose.msk.msra.mxu0 %vm3227_vm2, %v3217_v12  ;;  %2457 = vmatpush3.bf16.xpose.msk.msra.mxu1 %vm3227_vm2, %v3219_v53 }
 0x1e2   : > { %2103 = vmatmul.mubr.msk.f32.vlgmr.msra.gmra.mrb[6].mxu0 %vm889_vm1, %v888_v20  ;;  %2137 = vmatmul.mubr.msk.f32.vlgmr.msra.gmra.mrb[6].mxu1 %vm889_vm1, %v888_v20 }
 0x275   : > { %v1343_v51 = vpop.f32.mrb[4].mxu0  ;;  %v1414_v57 = vpop.f32.mrb[4].mxu1 }
 0x276   : > { %v1561_v63 = vmul.f32 %v1343_v51, %v1343_v51  ;;  %v1345_v6 = vpop.f32.mrb[5].mxu0  ;;  %v1416_v11 = vpop.f32.mrb[5].mxu1  ;;  %v1563_v31 = vmul.f32 %v1414_v57, %v1414_v57 }
 0x277   : > { %v1562_v30 = vmul.f32 %v1345_v6, %v1345_v6  ;;  %v1564_v21 = vmul.f32 %v1416_v11, %v1416_v11 }
 0x279   : > { %v1569_v48 = vadd.f32 %v1562_v30, %v1561_v63 }
 0x27b   : > { %v1570_v61 = vadd.f32 %v1569_v48, %v1563_v31 }
 0x27d   : > { %v1571_v62 = vadd.f32 %v1570_v61, %v1564_v21 }
 0x2b5   : > { %v1485_v44 = vpop.f32.mrb[6].mxu0  ;;  %v1556_v60 = vpop.f32.mrb[6].mxu1 }
 0x2b6   : > { %v1565_v38 = vmul.f32 %v1485_v44, %v1485_v44  ;;  %v1487_v39 = vpop.f32.mrb[7].mxu0  ;;  %v1558_v29 = vpop.f32.mrb[7].mxu1  ;;  %v1567_v49 = vmul.f32 %v1556_v60, %v1556_v60 }
 0x2b7   : > { %v1566_v0 = vmul.f32 %v1487_v39, %v1487_v39  ;;  %v1568_v53 = vmul.f32 %v1558_v29, %v1558_v29 }
 0x2b8   : > { %v1572_v1 = vadd.f32 %v1571_v62, %v1565_v38 }
 0x2ba   : > { %v1573_v12 = vadd.f32 %v1572_v1, %v1566_v0 }
 0x2bc   : > { %v1574_v22 = vadd.f32 %v1573_v12, %v1567_v49 }
 0x2be   : > { %v1575_v34 = vadd.f32 %v1574_v22, %v1568_v53 }
 0x2c0   : > { %1576 = vadd.xlane.f32.xlu1 %v1575_v34 }
 0x2c4   : > { %375 = vadd.xlane.f32.xlu1 %v374_v17 }
 0x34d   : > { %v1577_v27 = vpop.xlane.xlu1 %1576 }
 0x34e   : > { %2483 = vrsqrt.f32 %v1577_v27  ;;  %vm1580_vm5 = vcmp.eq.f32.partialorder %v1577_v27, inf  ;;  %v1583_v14 = vand.u32 2147483648, %v1577_v27  ;;  %vm1582_vm6 = vcmp.eq.f32.partialorder %v1577_v27, 0.0 }
 0x351   : > { %v376_v24 = vpop.xlane.xlu1 %375 }
 0x352   : > { %v377_v33 = vrot.slane %v376_v24, 4 }
 0x354   : > { %v378_v45 = vadd.f32 %v377_v33, %v376_v24 }
 0x356   : > { %v379_v54 = vrot.slane %v378_v45, 2 }
 0x358   : > { %v2484_v5 = vpop.eup %2483  ;;  %v380_v58 = vadd.f32 %v379_v54, %v378_v45 }
 0x359   : > { %v1579_v10 = vmul.f32 %v2484_v5, %v1577_v27 }
 0x35a   : > { %v381_v2 = vrot.slane %v380_v58, 1 }
 0x35b   : > { %v1581_v15 = vsel %vm1580_vm5, %v1577_v27, %v1579_v10 }
 0x35c   : > { %v1584_v19 = vsel %vm1582_vm6, %v1583_v14, %v1581_v15  ;;  %v382_v3 = vadd.f32 %v381_v2, %v380_v58 }
 0x35d   : > { %v1854_v23 = vadd.f32 -1.0, %v1584_v19 }
 0x35e   : > { %2458 = vpush %v382_v3 }
 0x35f   : > { %v1587_v28 = vmul.f32 %v1854_v23, %v1854_v23  ;;  %2460 = vpush %v398_v8 }
 0x361   : > { %v1588_v40 = vsel %vm373_vm4, %v1587_v28, 0.0 }
 0x362   : > { %1589 = vadd.xlane.f32.xlu1 %v1588_v40 }
 0x38f   : > { %s2459_s30 = spop %2458 }
 0x390   : > { %v384_v20 = vstv %s2459_s30  ;;  %s2461_s12 = spop %2460 }
 0x391   : > { %v385_v25 = vadd.f32 %v384_v20, %v371_v18  ;;  %v400_v36 = vstv %s2461_s12 }
 0x392   : > { %v401_v37 = vadd.f32 %v400_v36, %v388_v26 }
 0x393   : > { %387 = vst.msk [vmem:[#allocation2] sm:$0x1] %vm386_vm7, %v385_v25 }
 0x394   : > { %402 = vst.msk [vmem:[#allocation3] sm:$0x1] %vm386_vm7, %v401_v37 }
 0x39a   : > { %v1606_v6 = vld [vmem:[#allocation2] sm:$0x1] (!%p1855_p5) }
 0x39b   : > { %v1605_v63 = vld [vmem:[#allocation3] sm:$0x1] (!%p1855_p5) }
 0x39c   : > { %v1607_v30 = vsub.f32 (!%p1855_p5), %v1605_v63, %v1606_v6 }
 0x39e   : > { %v1608_v48 = vmul.f32 (!%p1855_p5), 0.0625, %v1607_v30 }
 0x3ef   : > { %v1590_v42 = vpop.xlane.xlu1 %1589 }
 0x3f0   : > { %v1591_v43 = vrot.slane %v1590_v42, 4 }
 0x3f2   : > { %v1592_v52 = vadd.f32 %v1591_v43, %v1590_v42 }
 0x3f4   : > { %v1593_v56 = vrot.slane %v1592_v52, 2 }
 0x3f6   : > { %v1594_v4 = vadd.f32 %v1593_v56, %v1592_v52 }
 0x3f8   : > { %v1595_v47 = vrot.slane %v1594_v4, 1 }
 0x3fa   : > { %v1596_v9 = vadd.f32 %v1595_v47, %v1594_v4 }
 0x3fc   : > { %2462 = vpush %v1596_v9 }
 0x42b   : > { %1604 = sbr.rel (%p1855_p5) target bundleno = 1086 (0x43e), region = 60 }
 0x42d   : > { %s2463_s15 = spop %2462 }
 0x42e   : > { %v1598_v51 = vstv %s2463_s15 }
 0x42f   : > { %v1599_v57 = vadd.f32 %v1598_v51, %v1585_v50 }
 0x431   : > { %1600 = vst.msk [vmem:[#allocation4] sm:$0x1] %vm386_vm7, %v1599_v57 }
 0x438   : > { %v1609_v11 = vld [vmem:[#allocation4] sm:$0x1] }
 0x439   : > { %v1610_v31 = vmul.f32 0.625, %v1609_v11 }
 0x43b   : > { %v1611_v21 = vadd.f32 %v1610_v31, %v1608_v48 }
 0x43d   : > { %1612 = vst.msk [vmem:[#allocation5] sm:$0x1] %vm386_vm7, %v1611_v21 }
 0x43e PF: > { %p2468_p6 = scmp.eq.s32.totalorder %s2578_s28, 1  ;;  %s2526_s16 = smov [#allocation5]  }
 0x43f   : > { %s1620_s17 = sshll.u32 %s2526_s16, 4  ;;  %s1621_s17 = int_to_ptr.vmem [resolvable:$true] %s1620_s17 }
 0x440   : > { %s2485_s18 = scalar_lea.vmem %s1621_s17, 16  ;;  %s2491_s19 = scalar_lea.vmem %s1621_s17, 32 }
 0x441   : > { %p2486_p7 = scmp.ne.s32.totalorder %s1621_s17, %s2485_s18  ;;  %p2492_p10 = scmp.lt.s32.totalorder %s1621_s17, %s1621_s17 }
 0x442   : > { %p2493_p11 = scmp.lt.s32.totalorder %s2491_s19, %s2485_s18 }
 0x443   : > { %p2487_p8 = pnand %p2486_p7, %p2468_p6 }
 0x444   : > { %p2494_p12 = por %p2493_p11, %p2492_p10 }
 0x445   : > { %p2488_p9 = pneg %p2487_p8 }
 0x447   : > { %p2495_p13 = pnand %p2494_p12, %p2488_p9 }
 0x449   : > { %2498 = shalt.err (!%p2495_p13)
}
 0x44a   : > { %s2499_s23 = scalar_lea.hbm %s3493_s8, 16 }
 0x44b   : > { %p2500_p0 = scmp.ne.s32.totalorder %s3493_s8, %s2499_s23  ;;  %p2505_p3 = scmp.lt.u32.totalorder %s2499_s23, %s3493_s8 }
 0x44d   : > { %p2501_p1 = pnand %p2500_p0, %p2468_p6 }
 0x44f   : > { %p2502_p2 = pneg %p2501_p1 }
 0x451   : > { %p2507_p4 = pnand %p2505_p3, %p2502_p2 }
 0x453   : > { %2510 = shalt.err (!%p2507_p4)
}
 0x454   : > { %2465 = dma.vmem_to_hbm [thread:$0]  (%p2468_p6), %s1621_s17, 16, %s3493_s8, [#allocation6]  }
 0x455   : > { %2516 = dma.done.wait (%p2468_p6), [#allocation6], 16  }
 0x456   : > { %2518 = vsyncadd (%p2468_p6), [#allocation6], 4294967280 }
 0x457 PF: > { %s19_s27 = sadd.s32 1, %s2521_s27  }
 0x458   : > { %p16_p5 = scmp.ge.s32.totalorder %s19_s27, 4  }
 0x45a   :  { %18 = sbr.rel (!%p16_p5) target bundleno = 1 (0x1), region = 99 }
 0x461   :  { %1633 = vsyncpa [#allocation6], 1 }
 0x462   :  { %1635 = vsyncpa [#allocation6 + $0x1], 1 }

</bundles_post_ra>
